<compile_context>
chip_gen: v6e
topology: v6e:2x2x1
jax: 0.10.0
libtpu: 0.0.40
codegen_flags: <defaults>
</compile_context>

<pallas_src>
import jax
import jax.numpy as jnp
from jax.experimental import pallas as pl
from jax.experimental.pallas import tpu as pltpu


def _cos_attn_sig_kernel(xq_ref, xk_ref, rq_ref, rk_ref, out_ref):
    # (TI, C) @ (C, TJ) in the operands' native dtype (bf16 x bf16 -> f32 is the
    # single-pass MXU fast path); accumulate in f32.
    energy = jnp.dot(xq_ref[0], xk_ref[0], preferred_element_type=jnp.float32)  # (TI, TJ)

    # rq carries 0.5 * rsqrt(||q_i||^2) (sigmoid prescale folded in); rk is rsqrt(||k_j||^2).
    # Both are hoisted to the wrapper, so the per-step epilogue is just two broadcast
    # multiplies + one EUP tanh + scale/shift.
    z_half = (energy * rq_ref[0]) * rk_ref[0]          # == 0.5 * cosine_similarity
    # TODO(synk): on v6e/v7x with a bf16 out_ref, run the tanh in bf16 (2x EUP throughput);
    # kept in f32 here so the same kernel is also correct/optimal on v5e (no bf16 EUP).
    out_ref[0] = (0.5 * jnp.tanh(z_half) + 0.5).astype(out_ref.dtype)


def _vmem_capacity_bytes() -> int:
    try:
        return int(pltpu.get_tpu_info().vmem_capacity_bytes)
    except Exception:
        return 64 * 1024 * 1024   # conservative default (v7x per-TensorCore VMEM)


def _choose_tiles(batch, C, n, in_bytes, out_bytes, budget):
    """Pick (row_tile TI, key_tile TJ, key_buffer_count) whose footprint fits `budget`."""
    cands = [t for t in (1024, 512, 256, 128) if n % t == 0] or [n]
    ti_cands = cands
    if batch == 1:
        two_plus = [t for t in cands if n // t >= 2]
        if two_plus:
            ti_cands = two_plus   # keep both v7x TensorCores busy for single-batch calls

    def footprint(ti, tj, key_bufs):
        return (2 * ti * C * in_bytes            # query tile, double buffered
                + key_bufs * C * tj * in_bytes   # key slab / tile
                + 2 * ti * tj * out_bytes        # output tile, double buffered
                + 2 * (ti * 128 + 8 * tj) * 4)   # rq/rk norm tiles (layout-padded f32)

    # 1) Whole-N key slab (fetched once per batch element).  Prefer the largest row tile
    #    (MXU weight-push amortization); only drop the keys to a single buffer when
    #    double-buffering them would not fit.
    for ti in ti_cands:
        for key_bufs in (2, 1):
            if footprint(ti, n, key_bufs) <= budget:
                return ti, n, key_bufs
    # 2) Tile the key/N axis as well (very large C*N, e.g. v7x's 64 MiB VMEM).
    for ti in ti_cands:
        for tj in cands:
            if footprint(ti, tj, 2) <= budget:
                return ti, tj, 2
    # 3) Last resort: smallest tiles.
    return ti_cands[-1], cands[-1], 2


def cos_attn_sig(x, out_dtype=None):
    """attention[b, i, j] = sigmoid(cos_sim(x[b, :, i], x[b, :, j]));  x: (B, C, W, H)."""
    B, C, W, H = x.shape
    N = W * H
    out_dtype = jnp.dtype(x.dtype if out_dtype is None else out_dtype)

    x_keys = x.reshape(B, C, N)

    # Lane-align the spatial axis: pad to a multiple of 128; padded rows/cols are sliced
    # off at the end (replaces the old un-tiled fallback that could silently blow VMEM).
    n_pad = N if N % 128 == 0 else ((N + 127) // 128) * 128
    if n_pad != N:
        x_keys = jnp.pad(x_keys, ((0, 0), (0, 0), (0, n_pad - N)))

    # Hoisted norm math: one pass over x here instead of an O(C*N) VPU reduce per row-tile
    # step inside the kernel.  Zero-norm columns give rsqrt(0)=inf, then 0*inf=NaN
    # downstream, matching PyTorch's 0/0 behavior.
    xf = x_keys.astype(jnp.float32)
    inv_norm = jax.lax.rsqrt(jnp.sum(xf * xf, axis=1))          # (B, n_pad)
    rq_half = (0.5 * inv_norm).reshape(B, n_pad, 1)             # folds sigmoid's 0.5 prescale
    rk = inv_norm.reshape(B, 1, n_pad)

    # Queries are the keys transposed; materialized once in the wrapper so the kernel
    # matmul is the canonical (TI, C) @ (C, TJ) MXU form on native-dtype operands.
    # TODO(synk): drop this extra B*C*N HBM pass by contracting dim 0 of both operands
    # (transposed-lhs dot_general) once Mosaic's transposed-lhs matmul path is verified.
    x_query = jnp.transpose(x_keys, (0, 2, 1))                  # (B, n_pad, C)

    cap = _vmem_capacity_bytes()
    TI, TJ, key_bufs = _choose_tiles(
        B, C, n_pad, x.dtype.itemsize, out_dtype.itemsize, budget=int(cap * 0.55))

    key_index = lambda b, i, j: (b, 0, j)
    if key_bufs == 1:
        # Key slab index only changes at batch boundaries; single-buffering halves the
        # largest VMEM consumer at the cost of one exposed DMA per batch element
        # (amortized over n_pad/TI row-tile steps).
        key_spec = pl.BlockSpec((1, C, TJ), key_index, pipeline_mode=pl.Buffered(1))
    else:
        key_spec = pl.BlockSpec((1, C, TJ), key_index)

    grid = (B, n_pad // TI, n_pad // TJ)

    out = pl.pallas_call(
        _cos_attn_sig_kernel,
        out_shape=jax.ShapeDtypeStruct((B, n_pad, n_pad), out_dtype),
        grid_spec=pltpu.PrefetchScalarGridSpec(
            num_scalar_prefetch=0,
            grid=grid,
            in_specs=[
                pl.BlockSpec((1, TI, C), lambda b, i, j: (b, i, 0)),   # query rows
                key_spec,                                              # key slab / key tile
                pl.BlockSpec((1, TI, 1), lambda b, i, j: (b, i, 0)),   # 0.5 * rsqrt(|q|^2)
                pl.BlockSpec((1, 1, TJ), lambda b, i, j: (b, 0, j)),   # rsqrt(|k|^2)
            ],
            out_specs=pl.BlockSpec((1, TI, TJ), lambda b, i, j: (b, i, j)),
        ),
        compiler_params=pltpu.CompilerParams(
            # Every output block is written exactly once and there is no cross-iteration
            # state, so all grid axes are megacore-parallel.
            dimension_semantics=("parallel", "parallel", "parallel"),
            vmem_limit_bytes=int(cap * 0.8),
        ),
    )(x_query, x_keys, rq_half, rk)

    if n_pad != N:
        out = out[:, :N, :N]
    return out


def _reference(x):
    B, C, W, H = x.shape
    N = W * H
    xf = x.reshape(B, C, N).astype(jnp.float32)
    q = jnp.transpose(xf, (0, 2, 1))                       # (B, N, C)
    energy = jnp.einsum('bic,bcj->bij', q, xf)             # (B, N, N)
    qn = jnp.sqrt(jnp.sum(q * q, axis=2))                  # (B, N)
    nm = qn[:, :, None] * qn[:, None, :]
    return jax.nn.sigmoid(energy / nm)


if __name__ == "__main__":
    key = jax.random.PRNGKey(0)

    # Primary check: f32 input, f32 output.
    B, C, W, H = 2, 32, 16, 16            # N = W*H = 256
    x = jax.random.normal(key, (B, C, W, H), jnp.float32)
    attn = jax.block_until_ready(cos_attn_sig(x))
    ref = _reference(x)
    assert attn.shape == (B, W * H, W * H), attn.shape
    # Tolerance covers the DEFAULT-precision (bf16-truncated) MXU path vs the XLA reference.
    assert jnp.allclose(attn, ref, rtol=2e-3, atol=2e-3), float(jnp.max(jnp.abs(attn - ref)))

    # bf16 activations streamed natively (single-pass bf16 MXU, half the input DMA bytes).
    x_bf16 = x.astype(jnp.bfloat16)
    attn_bf16 = jax.block_until_ready(cos_attn_sig(x_bf16))
    assert jnp.allclose(attn_bf16.astype(jnp.float32), ref, rtol=5e-2, atol=5e-2)

    # bf16 attention map from f32 input (the f32-output case is output-writeback bound).
    attn_o16 = jax.block_until_ready(cos_attn_sig(x, out_dtype=jnp.bfloat16))
    assert jnp.allclose(attn_o16.astype(jnp.float32), ref, rtol=2e-2, atol=1e-2)

    # Non-128-aligned spatial size + single batch (exercises padding and the B==1 tile cap).
    x2 = jax.random.normal(jax.random.PRNGKey(1), (1, 16, 12, 12), jnp.float32)
    attn2 = jax.block_until_ready(cos_attn_sig(x2))
    ref2 = _reference(x2)
    assert attn2.shape == (1, 144, 144), attn2.shape
    assert jnp.allclose(attn2, ref2, rtol=2e-3, atol=2e-3), float(jnp.max(jnp.abs(attn2 - ref2)))

    print("KERNEL_OK")
</pallas_src>

<mosaic_0001>
module attributes {stable_mosaic.version = 11 : i64} {
  func.func @_cos_attn_sig_kernel(%arg0: i32, %arg1: i32, %arg2: i32, %arg3: memref<1x256x32xf32, #tpu.memory_space<vmem>>, %arg4: memref<1x32x256xf32, #tpu.memory_space<vmem>>, %arg5: memref<1x256x1xf32, #tpu.memory_space<vmem>>, %arg6: memref<1x1x256xf32, #tpu.memory_space<vmem>>, %arg7: memref<1x256x256xf32, #tpu.memory_space<vmem>>) attributes {dimension_semantics = [#tpu.dimension_semantics<parallel>, #tpu.dimension_semantics<parallel>, #tpu.dimension_semantics<parallel>], iteration_bounds = array<i64: 2, 1, 1>, scalar_prefetch = 0 : i64, scratch_operands = 0 : i64, tpu.core_type = #tpu.core_type<tc>, window_params = [{transform_indices = @transform_0, window_bounds = array<i64: 1, 256, 32>}, {transform_indices = @transform_1, window_bounds = array<i64: 1, 32, 256>}, {transform_indices = @transform_2, window_bounds = array<i64: 1, 256, 1>}, {transform_indices = @transform_3, window_bounds = array<i64: 1, 1, 256>}, {transform_indices = @transform_4, window_bounds = array<i64: 1, 256, 256>}]} {
    %c0 = arith.constant 0 : index
    %c0_0 = arith.constant 0 : index
    %c0_1 = arith.constant 0 : index
    %0 = vector.load %arg3[%c0, %c0_0, %c0_1] : memref<1x256x32xf32, #tpu.memory_space<vmem>>, vector<1x256x32xf32>
    %1 = vector.shape_cast %0 : vector<1x256x32xf32> to vector<256x32xf32>
    %c0_2 = arith.constant 0 : index
    %c0_3 = arith.constant 0 : index
    %c0_4 = arith.constant 0 : index
    %2 = vector.load %arg4[%c0_2, %c0_3, %c0_4] : memref<1x32x256xf32, #tpu.memory_space<vmem>>, vector<1x32x256xf32>
    %3 = vector.shape_cast %2 : vector<1x32x256xf32> to vector<32x256xf32>
    %cst = arith.constant dense<0.000000e+00> : vector<256x256xf32>
    %4 = tpu.matmul %1, %3, %cst {dimension_numbers = #tpu.dot_dimension_numbers<[1], [0], [0], [1], [0, 0, 1, 1], [], []>} : vector<256x32xf32>, vector<32x256xf32>, vector<256x256xf32> -> vector<256x256xf32>
    %c0_5 = arith.constant 0 : index
    %c0_6 = arith.constant 0 : index
    %c0_7 = arith.constant 0 : index
    %5 = vector.load %arg5[%c0_5, %c0_6, %c0_7] : memref<1x256x1xf32, #tpu.memory_space<vmem>>, vector<1x256x1xf32>
    %6 = vector.shape_cast %5 : vector<1x256x1xf32> to vector<256x1xf32>
    %7 = vector.broadcast %6 : vector<256x1xf32> to vector<256x256xf32>
    %8 = arith.mulf %4, %7 : vector<256x256xf32>
    %c0_8 = arith.constant 0 : index
    %c0_9 = arith.constant 0 : index
    %c0_10 = arith.constant 0 : index
    %9 = vector.load %arg6[%c0_8, %c0_9, %c0_10] : memref<1x1x256xf32, #tpu.memory_space<vmem>>, vector<1x1x256xf32>
    %10 = vector.shape_cast %9 : vector<1x1x256xf32> to vector<1x256xf32>
    %11 = vector.broadcast %10 : vector<1x256xf32> to vector<256x256xf32>
    %12 = arith.mulf %8, %11 : vector<256x256xf32>
    %13 = math.tanh %12 : vector<256x256xf32>
    %cst_11 = arith.constant 5.000000e-01 : f32
    %14 = vector.broadcast %cst_11 : f32 to vector<256x256xf32>
    %15 = arith.mulf %14, %13 : vector<256x256xf32>
    %cst_12 = arith.constant 5.000000e-01 : f32
    %16 = vector.broadcast %cst_12 : f32 to vector<256x256xf32>
    %17 = arith.addf %15, %16 : vector<256x256xf32>
    %c0_13 = arith.constant 0 : index
    %c0_14 = arith.constant 0 : index
    %c0_15 = arith.constant 0 : index
    %18 = vector.load %arg7[%c0_13, %c0_14, %c0_15] : memref<1x256x256xf32, #tpu.memory_space<vmem>>, vector<1x256x256xf32>
    %19 = vector.shape_cast %18 : vector<1x256x256xf32> to vector<256x256xf32>
    %20 = vector.shape_cast %17 : vector<256x256xf32> to vector<1x256x256xf32>
    tpu.vector_store %arg7[%c0_13, %c0_14, %c0_15], %20 {strides = array<i32>} : memref<1x256x256xf32, #tpu.memory_space<vmem>>, vector<1x256x256xf32>,
    return
  }
  func.func @transform_0(%arg0: i32, %arg1: i32, %arg2: i32) -> (i32, i32, i32) {
    %c0_i32 = arith.constant 0 : i32
    %c0_i32_0 = arith.constant 0 : i32
    return %arg0, %arg1, %c0_i32 : i32, i32, i32
  }
  func.func @transform_1(%arg0: i32, %arg1: i32, %arg2: i32) -> (i32, i32, i32) {
    %c0_i32 = arith.constant 0 : i32
    %c0_i32_0 = arith.constant 0 : i32
    return %arg0, %c0_i32, %arg2 : i32, i32, i32
  }
  func.func @transform_2(%arg0: i32, %arg1: i32, %arg2: i32) -> (i32, i32, i32) {
    %c0_i32 = arith.constant 0 : i32
    %c0_i32_0 = arith.constant 0 : i32
    return %arg0, %arg1, %c0_i32 : i32, i32, i32
  }
  func.func @transform_3(%arg0: i32, %arg1: i32, %arg2: i32) -> (i32, i32, i32) {
    %c0_i32 = arith.constant 0 : i32
    %c0_i32_0 = arith.constant 0 : i32
    return %arg0, %c0_i32, %arg2 : i32, i32, i32
  }
  func.func @transform_4(%arg0: i32, %arg1: i32, %arg2: i32) -> (i32, i32, i32) {
    %c0_i32 = arith.constant 0 : i32
    return %arg0, %arg1, %arg2 : i32, i32, i32
  }
}

</mosaic_0001>

<bundles_post_ra>
// kernel: tpu_custom_call.1
= control target key start
LH: loop header
LB: loop body
LE: loop exit
PB: predicated region body
PF: predicated region fallthrough
CT: control target
= control target key end

     0   :  { %9 = vsyncpa [#allocation3], 0  ;;  %s2307_s0 = inlined_call_operand.vmem [shape: f32[2,256,32], index: 0, kind: input, shape index: {}]   ;;  %s2308_s1 = inlined_call_operand.vmem [shape: f32[2,32,256], index: 1, kind: input, shape index: {}]   ;;  %s2309_s2 = inlined_call_operand.vmem [shape: f32[2,256,1], index: 2, kind: input, shape index: {}]   ;;  %s2310_s3 = inlined_call_operand.vmem [shape: f32[2,1,256], index: 3, kind: input, shape index: {}]   ;;  %s2311_s4 = inlined_call_operand.hbm [shape: f32[2,256,256], index: 4, kind: output, shape index: {}]  }
   0x1   :  { %11 = vsyncpa [#allocation3 + $0x1], 0  ;;  %s1837_s15 = smov 0   ;;  %s1839_s16 = smov 0  }
   0x2   :  { %s1841_s17 = smov 0   ;;  %s1843_s18 = smov 0  }
   0x3   :  { %s1845_s19 = smov 0   ;;  %s1847_s20 = smov 0  }
   0x4 LB: > { %s1478_s21 = sadd.s32 4294967295, %s1805_s20   ;;  %s1479_s22 = sadd.s32 4294967294, %s1805_s20   ;;  %s1805_s20 = sphi %s1847_s20, %s17_s20   ;;  %s1801_s19 = sphi %s1845_s19, %s2318_s19   ;;  %s1797_s18 = sphi %s1843_s18, %s2317_s18   ;;  %s1793_s17 = sphi %s1841_s17, %s2316_s17   ;;  %s1789_s16 = sphi %s1839_s16, %s2315_s16   ;;  %s1785_s15 = sphi %s1837_s15, %s2314_s15  }
   0x5   : > { %s36_s23 = sadd.s32 1, %s1801_s19  ;;  %s159_s24 = sadd.s32 1, %s1793_s17 }
   0x6   : > { %p38_p0 = scmp.ge.s32.totalorder %s36_s23, 2  ;;  %p169_p1 = scmp.ne.s32.totalorder %s1793_s17, %s1789_s16 }
   0x7   : > { %p170_p2 = scmp.eq.s32.totalorder %s1478_s21, 1  ;;  %p175_p3 = scmp.ne.s32.totalorder %s1789_s16, %s1785_s15 }
   0x8   : > { %s2320_s23 = smov (%p38_p0, %s36_s23), 0  ;;  %p176_p5 = scmp.eq.s32.totalorder %s1479_s22, 1 }
   0x9   : > { %p1877_p4 = por %p170_p2, %p169_p1  ;;  %s152_s26 = ssub.s32 %s1801_s19, %s2320_s23 }
   0xa   : > { %p1482_p6 = scmp.ge.s32.totalorder %s1805_s20, 1  ;;  %p157_p7 = scmp.eq.s32.totalorder %s152_s26, 0 }
   0xb   : > { %p1884_p8 = por %p176_p5, %p175_p3  ;;  %p245_p9 = scmp.lt.s32.totalorder %s1805_s20, 3 }
   0xc   : > { %s1890_s28 = scalar_select %p157_p7, %s1793_s17, %s159_s24  }
   0xd   : > { %p246_p10 = pnand %p1482_p6, %p245_p9 }
   0xe   : > { %p302_p11 = scmp.lt.s32.totalorder (!%p246_p10), %s1797_s18, 1  ;;  %s1531_s6 = sshll.u32 (!%p246_p10), %s1797_s18, 13 }
   0xf   : > { %249 = sbr.rel (%p246_p10) target bundleno = 339 (0x153), region = 36  ;;  %s2253_s10 = scalar_lea.hbm (!%p246_p10), %s2311_s4, %s1531_s6 }
  0x10   : > { %s1809_s12 = smov (!%p246_p10), [#allocation2]  }
  0x11   : > { %s1733_s13 = sshll.u32 (!%p246_p10), %s1809_s12, 4  ;;  %s1734_s13 = int_to_ptr.vmem [resolvable:$false] %s1733_s13 }
  0x14   : > { %v1807_v0 = vmov 0.0   ;;  %s1896_s29 = scalar_select %p302_p11, %s1797_s18, 1  ;;  %v1808_v1 = vmov 0   ;;  %vm382_vm0 = vcmask 261120  }
  0x15   : > { %543 = vmatprep.mubr.f32.mxu0 %v1807_v0  ;;  %639 = vmatprep.mubr.f32.mxu1 %v1807_v0 }
  0x16   : > { %1600 = vset.pattern.permute.xlu1 %v1808_v1  ;;  %1599 = vset.pattern.permute.xlu0 %v1808_v1  ;;  %s1529_s30 = sshll.u32 %s1896_s29, 6  ;;  %s1528_s8 = sshll.u32 %s1896_s29, 8 }
  0x17   : > { %s319_s7 = scalar_lea.vmem %s2308_s1, %s1529_s30  ;;  %s1906_s11 = scalar_lea.vmem %s2307_s0, %s1528_s8 }
  0x18   : > { %v381_v2 = vld [vmem:[%s319_s7 + $0x38] sm:$0xff]  ;;  %v380_v3 = vld [vmem:[%s319_s7 + $0x30] sm:$0xff]  ;;  %v379_v4 = vld [vmem:[%s319_s7 + $0x28] sm:$0xff]  ;;  %s1911_s14 = scalar_lea.vmem %s2309_s2, %s1528_s8  ;;  %s1490_s21 = sshll.u32 %s1896_s29, 1 }
  0x19   : > { %503 = vmatprep.subr.mxu0 %v381_v2  ;;  %1532 = vmatprep.subr.mxu1 %v381_v2  ;;  %v378_v5 = vld [vmem:[%s319_s7 + $0x20] sm:$0xff]  ;;  %v377_v6 = vld [vmem:[%s319_s7 + $0x18] sm:$0xff]  ;;  %v376_v7 = vld [vmem:[%s319_s7 + $0x10] sm:$0xff]  ;;  %s338_s26 = scalar_lea.vmem %s2310_s3, %s1490_s21  ;;  %s298_s29 = sand.u32 1, %s1789_s16  }
  0x1a   : > { %504 = vmatpush1.msra.mxu0 %v380_v3  ;;  %1536 = vmatpush1.msra.mxu1 %v380_v3  ;;  %v375_v8 = vld [vmem:[%s319_s7 + $0x8] sm:$0xff]  ;;  %v374_v9 = vld [vmem:[%s319_s7] sm:$0xff]  ;;  %v738_v12 = vld [vmem:[%s1911_s14 + $0x10] sm:$0xff]  ;;  %s2096_s30 = sshll.u32 %s298_s29, 9  ;;  %s2262_s18 = scalar_lea.sflag [#allocation3], %s298_s29 }
  0x1b   : > { %505 = vmatprep.subr.mxu0 %v379_v4  ;;  %1533 = vmatprep.subr.mxu1 %v379_v4  ;;  %v342_v10 = vld [vmem:[%s1906_s11] sm:$0xff]  ;;  %v343_v14 = vld [vmem:[%s1906_s11 + $0x8] sm:$0xff]  ;;  %v739_v16 = vld [vmem:[%s1911_s14 + $0x18] sm:$0xff]  ;;  %s2107_s5 = scalar_lea.vmem [#allocation2], %s2096_s30 }
  0x1c   : > { %506 = vmatpush1.msra.mxu0 %v378_v5  ;;  %1537 = vmatpush1.msra.mxu1 %v378_v5  ;;  %v358_v11 = vld [vmem:[%s1906_s11 + $0x80] sm:$0xff]  ;;  %v359_v15 = vld [vmem:[%s1906_s11 + $0x88] sm:$0xff]  ;;  %v344_v18 = vld [vmem:[%s1906_s11 + $0x10] sm:$0xff]  ;;  %s1343_s7 = sshll.u32 %s2107_s5, 4  ;;  %s2255_s7 = int_to_ptr.vmem [resolvable:$true] %s1343_s7 }
  0x1d   : > { %507 = vmatprep.subr.mxu0 %v377_v6  ;;  %1534 = vmatprep.subr.mxu1 %v377_v6  ;;  %v736_v13 = vld [vmem:[%s1911_s14] sm:$0xff]  ;;  %v737_v17 = vld [vmem:[%s1911_s14 + $0x8] sm:$0xff]  ;;  %v360_v19 = vld [vmem:[%s1906_s11 + $0x90] sm:$0xff]  ;;  %p1736_p1 = scmp.lt.s32.totalorder %s2255_s7, %s1734_s13 }
  0x1e   : > { %508 = vmatpush1.msra.mxu0 %v376_v7  ;;  %1538 = vmatpush1.msra.mxu1 %v376_v7  ;;  %v741_v20 = vld [vmem:[%s1911_s14 + $0x28] sm:$0xff]  ;;  %v740_v21 = vld [vmem:[%s1911_s14 + $0x20] sm:$0xff]  ;;  %v345_v22 = vld [vmem:[%s1906_s11 + $0x18] sm:$0xff] }
  0x1f   : > { %509 = vmatprep.subr.mxu0 %v375_v8  ;;  %1535 = vmatprep.subr.mxu1 %v375_v8  ;;  %v361_v23 = vld [vmem:[%s1906_s11 + $0x98] sm:$0xff]  ;;  %v742_v25 = vld [vmem:[%s1911_s14 + $0x30] sm:$0xff]  ;;  %v346_v26 = vld [vmem:[%s1906_s11 + $0x20] sm:$0xff] }
  0x20   : > { %510 = vmatpush1.msra.mxu0 %v374_v9  ;;  %1539 = vmatpush1.msra.mxu1 %v374_v9  ;;  %v743_v24 = vld [vmem:[%s1911_s14 + $0x38] sm:$0xff]  ;;  %v362_v27 = vld [vmem:[%s1906_s11 + $0xa0] sm:$0xff]  ;;  %v745_v28 = vld [vmem:[%s1911_s14 + $0x48] sm:$0xff] }
  0x21   : > { %1491 = vmatmul.mubr.msk.f32.vlgmr.msra.gmra.mxu0 %vm382_vm0, %v342_v10  ;;  %1507 = vmatmul.mubr.msk.f32.vlgmr.msra.gmra.mxu1 %vm382_vm0, %v358_v11  ;;  %v744_v29 = vld [vmem:[%s1911_s14 + $0x40] sm:$0xff]  ;;  %v347_v30 = vld [vmem:[%s1906_s11 + $0x28] sm:$0xff]  ;;  %v747_v32 = vld [vmem:[%s1911_s14 + $0x58] sm:$0xff] }
  0x22   : > { %549 = vmatprep.mubr.f32.mxu0 %v1807_v0  ;;  %645 = vmatprep.mubr.f32.mxu1 %v1807_v0  ;;  %v363_v31 = vld [vmem:[%s1906_s11 + $0xa8] sm:$0xff]  ;;  %v746_v33 = vld [vmem:[%s1911_s14 + $0x50] sm:$0xff]  ;;  %v748_v37 = vld [vmem:[%s1911_s14 + $0x60] sm:$0xff] }
  0x23   : > { %780 = vperm.xlu1 %1600, %v738_v12   ;;  %770 = vperm.xlu0 %1599, %v736_v13   ;;  %v348_v34 = vld [vmem:[%s1906_s11 + $0x30] sm:$0xff]  ;;  %v749_v36 = vld [vmem:[%s1911_s14 + $0x68] sm:$0xff]  ;;  %v349_v38 = vld [vmem:[%s1906_s11 + $0x38] sm:$0xff] }
  0x24   : > { %v364_v35 = vld [vmem:[%s1906_s11 + $0xb0] sm:$0xff]  ;;  %v365_v39 = vld [vmem:[%s1906_s11 + $0xb8] sm:$0xff]  ;;  %v350_v42 = vld [vmem:[%s1906_s11 + $0x40] sm:$0xff] }
  0x25   : > { %1492 = vmatmul.mubr.msk.f32.gmra.mxu0 %vm382_vm0, %v343_v14  ;;  %1508 = vmatmul.mubr.msk.f32.gmra.mxu1 %vm382_vm0, %v359_v15  ;;  %v751_v40 = vld [vmem:[%s1911_s14 + $0x78] sm:$0xff]  ;;  %v750_v41 = vld [vmem:[%s1911_s14 + $0x70] sm:$0xff]  ;;  %v366_v43 = vld [vmem:[%s1906_s11 + $0xc0] sm:$0xff] }
  0x26   : > { %555 = vmatprep.mubr.f32.mxu0 %v1807_v0  ;;  %651 = vmatprep.mubr.f32.mxu1 %v1807_v0  ;;  %v753_v44 = vld [vmem:[%s1911_s14 + $0x88] sm:$0xff]  ;;  %v752_v45 = vld [vmem:[%s1911_s14 + $0x80] sm:$0xff]  ;;  %v755_v48 = vld [vmem:[%s1911_s14 + $0x98] sm:$0xff] }
  0x27   : > { %785 = vperm.xlu1 %1600, %v739_v16   ;;  %775 = vperm.xlu0 %1599, %v737_v17   ;;  %v351_v46 = vld [vmem:[%s1906_s11 + $0x48] sm:$0xff]  ;;  %v754_v49 = vld [vmem:[%s1911_s14 + $0x90] sm:$0xff]  ;;  %v756_v53 = vld [vmem:[%s1911_s14 + $0xa0] sm:$0xff] }
  0x28   : > { %v367_v47 = vld [vmem:[%s1906_s11 + $0xc8] sm:$0xff]  ;;  %v352_v50 = vld [vmem:[%s1906_s11 + $0x50] sm:$0xff]  ;;  %v353_v54 = vld [vmem:[%s1906_s11 + $0x58] sm:$0xff] }
  0x29   : > { %1493 = vmatmul.mubr.msk.f32.gmra.mxu0 %vm382_vm0, %v344_v18  ;;  %1509 = vmatmul.mubr.msk.f32.gmra.mxu1 %vm382_vm0, %v360_v19  ;;  %v368_v51 = vld [vmem:[%s1906_s11 + $0xd0] sm:$0xff]  ;;  %v757_v52 = vld [vmem:[%s1911_s14 + $0xa8] sm:$0xff]  ;;  %v369_v55 = vld [vmem:[%s1906_s11 + $0xd8] sm:$0xff] }
  0x2a   : > { %561 = vmatprep.mubr.f32.mxu0 %v1807_v0  ;;  %657 = vmatprep.mubr.f32.mxu1 %v1807_v0  ;;  %v759_v56 = vld [vmem:[%s1911_s14 + $0xb8] sm:$0xff]  ;;  %v758_v57 = vld [vmem:[%s1911_s14 + $0xb0] sm:$0xff]  ;;  %v354_v58 = vld [vmem:[%s1906_s11 + $0x60] sm:$0xff] }
  0x2b   : > { %795 = vperm.xlu1 %1600, %v741_v20   ;;  %790 = vperm.xlu0 %1599, %v740_v21   ;;  %v370_v59 = vld [vmem:[%s1906_s11 + $0xe0] sm:$0xff]  ;;  %v761_v60 = vld [vmem:[%s1911_s14 + $0xc8] sm:$0xff]  ;;  %v763_v1 = vld [vmem:[%s1911_s14 + $0xd8] sm:$0xff]  ;;  %v994_v21 = vlaneseq }
  0x2c   : > { %v760_v61 = vld [vmem:[%s1911_s14 + $0xc0] sm:$0xff]  ;;  %v355_v62 = vld [vmem:[%s1906_s11 + $0x68] sm:$0xff]  ;;  %v762_v2 = vld [vmem:[%s1911_s14 + $0xd0] sm:$0xff] }
  0x2d   : > { %1494 = vmatmul.mubr.msk.f32.gmra.mxu0 %vm382_vm0, %v345_v22  ;;  %1510 = vmatmul.mubr.msk.f32.gmra.mxu1 %vm382_vm0, %v361_v23  ;;  %v371_v63 = vld [vmem:[%s1906_s11 + $0xe8] sm:$0xff]  ;;  %v356_v3 = vld [vmem:[%s1906_s11 + $0x70] sm:$0xff]  ;;  %v764_v6 = vld [vmem:[%s1911_s14 + $0xe0] sm:$0xff] }
  0x2e   : > { %567 = vmatprep.mubr.f32.mxu0 %v1807_v0  ;;  %663 = vmatprep.mubr.f32.mxu1 %v1807_v0  ;;  %v372_v4 = vld [vmem:[%s1906_s11 + $0xf0] sm:$0xff]  ;;  %v765_v5 = vld [vmem:[%s1911_s14 + $0xe8] sm:$0xff]  ;;  %v357_v7 = vld [vmem:[%s1906_s11 + $0x78] sm:$0xff] }
  0x2f   : > { %805 = vperm.xlu1 %1600, %v743_v24   ;;  %800 = vperm.xlu0 %1599, %v742_v25   ;;  %v373_v8 = vld [vmem:[%s1906_s11 + $0xf8] sm:$0xff]  ;;  %v766_v10 = vld [vmem:[%s1911_s14 + $0xf0] sm:$0xff]  ;;  %v995_v24 = vshrl.u32 %v994_v21, 7  ;;  %s1729_s11 = scalar_lea.vmem %s2255_s7, 8192 }
  0x30   : > { %v767_v9 = vld [vmem:[%s1911_s14 + $0xf8] sm:$0xff]  ;;  %p1730_p12 = scmp.ne.s32.totalorder %s2255_s7, %s1729_s11  ;;  %s1735_s14 = scalar_lea.vmem %s1734_s13, 16384 }
  0x31   : > { %1495 = vmatmul.mubr.msk.f32.gmra.mxu0 %vm382_vm0, %v346_v26  ;;  %1511 = vmatmul.mubr.msk.f32.gmra.mxu1 %vm382_vm0, %v362_v27  ;;  %v996_v27 = vsub.s32 0, %v995_v24  ;;  %p1737_p2 = scmp.lt.s32.totalorder %s1735_s14, %s1729_s11 }
  0x32   : > { %573 = vmatprep.mubr.f32.mxu0 %v1807_v0  ;;  %669 = vmatprep.mubr.f32.mxu1 %v1807_v0  ;;  %p1731_p13 = pnand %p1730_p12, %p1877_p4 }
  0x33   : > { %815 = vperm.xlu1 %1600, %v745_v28   ;;  %810 = vperm.xlu0 %1599, %v744_v29   ;;  %v992_v28 = vld [vmem:[%s338_s26] sm:$0x3]  ;;  %v1000_v29 = vsub.s32 1, %v995_v24  ;;  %p1738_p3 = por %p1737_p2, %p1736_p1 }
  0x34   : > { %p1732_p0 = pneg %p1731_p13 }
  0x35   : > { %1496 = vmatmul.mubr.msk.f32.gmra.mxu0 %vm382_vm0, %v347_v30  ;;  %1512 = vmatmul.mubr.msk.f32.gmra.mxu1 %vm382_vm0, %v363_v31  ;;  %v2069_v30 = vrot.slane %v992_v28, %v996_v27 }
  0x36   : > { %579 = vmatprep.mubr.f32.mxu0 %v1807_v0  ;;  %675 = vmatprep.mubr.f32.mxu1 %v1807_v0  ;;  %p1739_p5 = pnand %p1738_p3, %p1732_p0 }
  0x37   : > { %825 = vperm.xlu1 %1600, %v747_v32   ;;  %820 = vperm.xlu0 %1599, %v746_v33  }
  0x39   : > { %1497 = vmatmul.mubr.msk.f32.gmra.mxu0 %vm382_vm0, %v348_v34  ;;  %1513 = vmatmul.mubr.msk.f32.gmra.mxu1 %vm382_vm0, %v364_v35  ;;  %v2073_v35 = vrot.slane %v992_v28, %v1000_v29 }
  0x3a   : > { %585 = vmatprep.mubr.f32.mxu0 %v1807_v0  ;;  %681 = vmatprep.mubr.f32.mxu1 %v1807_v0 }
  0x3b   : > { %835 = vperm.xlu1 %1600, %v749_v36   ;;  %830 = vperm.xlu0 %1599, %v748_v37  }
  0x3d   : > { %1498 = vmatmul.mubr.msk.f32.gmra.mxu0 %vm382_vm0, %v349_v38  ;;  %1514 = vmatmul.mubr.msk.f32.gmra.mxu1 %vm382_vm0, %v365_v39 }
  0x3e   : > { %591 = vmatprep.mubr.f32.mxu0 %v1807_v0  ;;  %687 = vmatprep.mubr.f32.mxu1 %v1807_v0 }
  0x3f   : > { %845 = vperm.xlu1 %1600, %v751_v40   ;;  %840 = vperm.xlu0 %1599, %v750_v41  }
  0x41   : > { %1499 = vmatmul.mubr.msk.f32.gmra.mxu0 %vm382_vm0, %v350_v42  ;;  %1515 = vmatmul.mubr.msk.f32.gmra.mxu1 %vm382_vm0, %v366_v43 }
  0x42   : > { %597 = vmatprep.mubr.f32.mxu0 %v1807_v0  ;;  %693 = vmatprep.mubr.f32.mxu1 %v1807_v0 }
  0x43   : > { %855 = vperm.xlu1 %1600, %v753_v44   ;;  %850 = vperm.xlu0 %1599, %v752_v45  }
  0x45   : > { %1500 = vmatmul.mubr.msk.f32.gmra.mxu0 %vm382_vm0, %v351_v46  ;;  %1516 = vmatmul.mubr.msk.f32.gmra.mxu1 %vm382_vm0, %v367_v47 }
  0x46   : > { %603 = vmatprep.mubr.f32.mxu0 %v1807_v0  ;;  %699 = vmatprep.mubr.f32.mxu1 %v1807_v0 }
  0x47   : > { %865 = vperm.xlu1 %1600, %v755_v48   ;;  %860 = vperm.xlu0 %1599, %v754_v49  }
  0x49   : > { %1501 = vmatmul.mubr.msk.f32.gmra.mxu0 %vm382_vm0, %v352_v50  ;;  %1517 = vmatmul.mubr.msk.f32.gmra.mxu1 %vm382_vm0, %v368_v51 }
  0x4a   : > { %609 = vmatprep.mubr.f32.mxu0 %v1807_v0  ;;  %705 = vmatprep.mubr.f32.mxu1 %v1807_v0 }
  0x4b   : > { %875 = vperm.xlu1 %1600, %v757_v52   ;;  %870 = vperm.xlu0 %1599, %v756_v53  }
  0x4d   : > { %1502 = vmatmul.mubr.msk.f32.gmra.mxu0 %vm382_vm0, %v353_v54  ;;  %1518 = vmatmul.mubr.msk.f32.gmra.mxu1 %vm382_vm0, %v369_v55 }
  0x4e   : > { %615 = vmatprep.mubr.f32.mxu0 %v1807_v0  ;;  %711 = vmatprep.mubr.f32.mxu1 %v1807_v0 }
  0x4f   : > { %885 = vperm.xlu1 %1600, %v759_v56   ;;  %880 = vperm.xlu0 %1599, %v758_v57  }
  0x51   : > { %1503 = vmatmul.mubr.msk.f32.gmra.mxu0 %vm382_vm0, %v354_v58  ;;  %1519 = vmatmul.mubr.msk.f32.gmra.mxu1 %vm382_vm0, %v370_v59 }
  0x52   : > { %621 = vmatprep.mubr.f32.mxu0 %v1807_v0  ;;  %717 = vmatprep.mubr.f32.mxu1 %v1807_v0 }
  0x53   : > { %895 = vperm.xlu1 %1600, %v761_v60   ;;  %890 = vperm.xlu0 %1599, %v760_v61  }
  0x55   : > { %1504 = vmatmul.mubr.msk.f32.gmra.mxu0 %vm382_vm0, %v355_v62  ;;  %1520 = vmatmul.mubr.msk.f32.gmra.mxu1 %vm382_vm0, %v371_v63 }
  0x56   : > { %627 = vmatprep.mubr.f32.mxu0 %v1807_v0  ;;  %723 = vmatprep.mubr.f32.mxu1 %v1807_v0 }
  0x57   : > { %905 = vperm.xlu1 %1600, %v763_v1   ;;  %900 = vperm.xlu0 %1599, %v762_v2  }
  0x59   : > { %1505 = vmatmul.mubr.msk.f32.gmra.mxu0 %vm382_vm0, %v356_v3  ;;  %1521 = vmatmul.mubr.msk.f32.gmra.mxu1 %vm382_vm0, %v372_v4 }
  0x5a   : > { %633 = vmatprep.mubr.f32.mxu0 %v1807_v0  ;;  %729 = vmatprep.mubr.f32.mxu1 %v1807_v0 }
  0x5b   : > { %915 = vperm.xlu1 %1600, %v765_v5   ;;  %910 = vperm.xlu0 %1599, %v764_v6  }
  0x5d   : > { %1506 = vmatmul.mubr.msk.f32.gmra.mxu0 %vm382_vm0, %v357_v7  ;;  %1522 = vmatmul.mubr.msk.f32.gmra.mxu1 %vm382_vm0, %v373_v8 }
  0x5f   : > { %925 = vperm.xlu1 %1600, %v767_v9   ;;  %920 = vperm.xlu0 %1599, %v766_v10  }
  0x9e   : > { %v771_v11 = vpop.permute.xlu0 %770  ;;  %v2039_v12 = vpop.permute.xlu1 %780 }
  0xa2   : > { %v776_v13 = vpop.permute.xlu0 %775  ;;  %v2041_v14 = vpop.permute.xlu1 %785 }
  0xa6   : > { %v2043_v0 = vpop.permute.xlu0 %790  ;;  %v2045_v15 = vpop.permute.xlu1 %795 }
  0xaa   : > { %v2047_v16 = vpop.permute.xlu0 %800  ;;  %v2049_v17 = vpop.permute.xlu1 %805 }
  0xae   : > { %v2051_v18 = vpop.permute.xlu0 %810  ;;  %v2053_v19 = vpop.permute.xlu1 %815 }
  0xb2   : > { %v2055_v20 = vpop.permute.xlu0 %820  ;;  %v2057_v22 = vpop.permute.xlu1 %825 }
  0xb6   : > { %v2059_v23 = vpop.permute.xlu0 %830  ;;  %v2065_v25 = vpop.permute.xlu1 %835 }
  0xba   : > { %v2067_v26 = vpop.permute.xlu0 %840  ;;  %v2071_v31 = vpop.permute.xlu1 %845 }
  0xbe   : > { %v851_v32 = vpop.permute.xlu0 %850  ;;  %v856_v46 = vpop.permute.xlu1 %855 }
  0xc2   : > { %v861_v59 = vpop.permute.xlu0 %860  ;;  %v866_v9 = vpop.permute.xlu1 %865 }
  0xe1   : > { %v545_v33 = vpop.f32.mrf.mxu0  ;;  %v641_v34 = vpop.f32.mrf.mxu1 }
  0xe2   : > { %v928_v36 = vmul.f32 %v771_v11, %v545_v33  ;;  %v960_v37 = vmul.f32 %v851_v32, %v641_v34 }
  0xe3   : > { %v547_v38 = vpop.f32.mrf.mxu0  ;;  %v643_v39 = vpop.f32.mrf.mxu1 }
  0xe4   : > { %v1004_v40 = vmul.f32 %v2069_v30, %v928_v36  ;;  %v1036_v41 = vmul.f32 %v2069_v30, %v960_v37  ;;  %v929_v42 = vmul.f32 %v771_v11, %v547_v38  ;;  %v961_v43 = vmul.f32 %v851_v32, %v643_v39  ;;  %v871_v36 = vpop.permute.xlu0 %870 }
  0xe5   : > { %v551_v44 = vpop.f32.mrf.mxu0  ;;  %v647_v45 = vpop.f32.mrf.mxu1 }
  0xe6   : > { %1601 = vtanh.f32 %v1004_v40  ;;  %v1005_v47 = vmul.f32 %v2073_v35, %v929_v42  ;;  %v1037_v48 = vmul.f32 %v2073_v35, %v961_v43  ;;  %v930_v49 = vmul.f32 %v776_v13, %v551_v44 }
  0xe7   : > { %1603 = vtanh.f32 %v1036_v41  ;;  %v962_v50 = vmul.f32 %v856_v46, %v647_v45  ;;  %v553_v51 = vpop.f32.mrf.mxu0  ;;  %v649_v52 = vpop.f32.mrf.mxu1 }
  0xe8   : > { %1605 = vtanh.f32 %v1005_v47  ;;  %v1006_v53 = vmul.f32 %v2069_v30, %v930_v49  ;;  %v931_v54 = vmul.f32 %v776_v13, %v553_v51  ;;  %v963_v55 = vmul.f32 %v856_v46, %v649_v52 }
  0xe9   : > { %1607 = vtanh.f32 %v1037_v48  ;;  %v1038_v56 = vmul.f32 %v2069_v30, %v962_v50  ;;  %v557_v57 = vpop.f32.mrf.mxu0  ;;  %v653_v58 = vpop.f32.mrf.mxu1 }
  0xea   : > { %1609 = vtanh.f32 %v1006_v53  ;;  %v1007_v60 = vmul.f32 %v2073_v35, %v931_v54  ;;  %v1039_v61 = vmul.f32 %v2073_v35, %v963_v55  ;;  %v932_v62 = vmul.f32 %v2039_v12, %v557_v57 }
  0xeb   : > { %1611 = vtanh.f32 %v1038_v56  ;;  %v964_v63 = vmul.f32 %v861_v59, %v653_v58  ;;  %v559_v1 = vpop.f32.mrf.mxu0  ;;  %v655_v2 = vpop.f32.mrf.mxu1 }
  0xec   : > { %1613 = vtanh.f32 %v1007_v60  ;;  %v1008_v3 = vmul.f32 %v2069_v30, %v932_v62  ;;  %v933_v4 = vmul.f32 %v2039_v12, %v559_v1  ;;  %v965_v5 = vmul.f32 %v861_v59, %v655_v2 }
  0xed   : > { %1615 = vtanh.f32 %v1039_v61  ;;  %v1040_v6 = vmul.f32 %v2069_v30, %v964_v63  ;;  %v563_v7 = vpop.f32.mrf.mxu0  ;;  %v659_v8 = vpop.f32.mrf.mxu1 }
  0xee   : > { %1617 = vtanh.f32 %v1008_v3  ;;  %v1009_v10 = vmul.f32 %v2073_v35, %v933_v4  ;;  %v1041_v11 = vmul.f32 %v2073_v35, %v965_v5  ;;  %v934_v13 = vmul.f32 %v2041_v14, %v563_v7  ;;  %v876_v63 = vpop.permute.xlu1 %875 }
  0xef   : > { %1619 = vtanh.f32 %v1040_v6  ;;  %v966_v21 = vmul.f32 %v866_v9, %v659_v8  ;;  %v565_v24 = vpop.f32.mrf.mxu0  ;;  %v661_v12 = vpop.f32.mrf.mxu1 }
  0xf0   : > { %1621 = vtanh.f32 %v1009_v10  ;;  %v1010_v27 = vmul.f32 %v2069_v30, %v934_v13  ;;  %v935_v28 = vmul.f32 %v2041_v14, %v565_v24  ;;  %v967_v29 = vmul.f32 %v866_v9, %v661_v12 }
  0xf1   : > { %1623 = vtanh.f32 %v1041_v11  ;;  %v1042_v32 = vmul.f32 %v2069_v30, %v966_v21  ;;  %v569_v33 = vpop.f32.mrf.mxu0  ;;  %v665_v34 = vpop.f32.mrf.mxu1 }
  0xf2   : > { %1625 = vtanh.f32 %v1010_v27  ;;  %v1011_v37 = vmul.f32 %v2073_v35, %v935_v28  ;;  %v1043_v38 = vmul.f32 %v2073_v35, %v967_v29  ;;  %v936_v39 = vmul.f32 %v2043_v0, %v569_v33 }
  0xf3   : > { %v1602_v40 = vpop.eup %1601  ;;  %1627 = vtanh.f32 %v1042_v32  ;;  %v968_v14 = vmul.f32 %v871_v36, %v665_v34  ;;  %v571_v41 = vpop.f32.mrf.mxu0 }
  0xf4   : > { %v667_v42 = vpop.f32.mrf.mxu1  ;;  %v1604_v43 = vpop.eup %1603  ;;  %v1132_v44 = vmul.f32 0.5, %v1602_v40  ;;  %1629 = vtanh.f32 %v1011_v37  ;;  %v1012_v45 = vmul.f32 %v2069_v30, %v936_v39  ;;  %v937_v46 = vmul.f32 %v2043_v0, %v571_v41 }
  0xf5   : > { %v1606_v47 = vpop.eup %1605  ;;  %v1164_v48 = vmul.f32 0.5, %v1604_v43  ;;  %1631 = vtanh.f32 %v1043_v38  ;;  %v1044_v49 = vmul.f32 %v2069_v30, %v968_v14  ;;  %v969_v50 = vmul.f32 %v871_v36, %v667_v42  ;;  %v575_v51 = vpop.f32.mrf.mxu0 }
  0xf6   : > { %v671_v52 = vpop.f32.mrf.mxu1  ;;  %v1608_v53 = vpop.eup %1607  ;;  %v1196_v54 = vadd.f32 0.5, %v1132_v44  ;;  %v1133_v55 = vmul.f32 0.5, %v1606_v47  ;;  %1633 = vtanh.f32 %v1012_v45  ;;  %v1013_v56 = vmul.f32 %v2073_v35, %v937_v46 }
  0xf7   : > { %v1610_v57 = vpop.eup %1609  ;;  %v1228_v58 = vadd.f32 0.5, %v1164_v48  ;;  %v1165_v59 = vmul.f32 0.5, %v1608_v53  ;;  %1635 = vtanh.f32 %v1044_v49  ;;  %v1045_v0 = vmul.f32 %v2073_v35, %v969_v50  ;;  %v577_v60 = vpop.f32.mrf.mxu0 }
  0xf8   : > { %v673_v61 = vpop.f32.mrf.mxu1  ;;  %v1612_v62 = vpop.eup %1611  ;;  %1260 = vst [vmem:[%s2107_s5] sm:$0xff] %v1196_v54  ;;  %v1197_v1 = vadd.f32 0.5, %v1133_v55  ;;  %v1134_v2 = vmul.f32 0.5, %v1610_v57  ;;  %1637 = vtanh.f32 %v1013_v56  ;;  %v938_v3 = vmul.f32 %v2045_v15, %v575_v51 }
  0xf9   : > { %v1614_v4 = vpop.eup %1613  ;;  %1292 = vst [vmem:[%s2107_s5 + $0x100] sm:$0xff] %v1228_v58  ;;  %v1229_v5 = vadd.f32 0.5, %v1165_v59  ;;  %v1166_v6 = vmul.f32 0.5, %v1612_v62  ;;  %1639 = vtanh.f32 %v1045_v0  ;;  %v970_v7 = vmul.f32 %v876_v63, %v671_v52  ;;  %v581_v8 = vpop.f32.mrf.mxu0 }
  0xfa   : > { %v677_v9 = vpop.f32.mrf.mxu1  ;;  %v1616_v10 = vpop.eup %1615  ;;  %1261 = vst [vmem:[%s2107_s5 + $0x8] sm:$0xff] %v1197_v1  ;;  %v1198_v11 = vadd.f32 0.5, %v1134_v2  ;;  %v1135_v13 = vmul.f32 0.5, %v1614_v4  ;;  %v1014_v21 = vmul.f32 %v2069_v30, %v938_v3  ;;  %v939_v24 = vmul.f32 %v2045_v15, %v577_v60 }
  0xfb   : > { %v1618_v12 = vpop.eup %1617  ;;  %1293 = vst [vmem:[%s2107_s5 + $0x108] sm:$0xff] %v1229_v5  ;;  %v1230_v27 = vadd.f32 0.5, %v1166_v6  ;;  %v1167_v28 = vmul.f32 0.5, %v1616_v10  ;;  %v1046_v29 = vmul.f32 %v2069_v30, %v970_v7  ;;  %v971_v32 = vmul.f32 %v876_v63, %v673_v61  ;;  %v583_v33 = vpop.f32.mrf.mxu0 }
  0xfc   : > { %v679_v34 = vpop.f32.mrf.mxu1  ;;  %v1620_v36 = vpop.eup %1619  ;;  %1262 = vst [vmem:[%s2107_s5 + $0x10] sm:$0xff] %v1198_v11  ;;  %v1199_v37 = vadd.f32 0.5, %v1135_v13  ;;  %v1136_v38 = vmul.f32 0.5, %v1618_v12  ;;  %1641 = vtanh.f32 %v1014_v21  ;;  %v1015_v39 = vmul.f32 %v2073_v35, %v939_v24 }
  0xfd   : > { %v1622_v40 = vpop.eup %1621  ;;  %1294 = vst [vmem:[%s2107_s5 + $0x110] sm:$0xff] %v1230_v27  ;;  %v1231_v15 = vadd.f32 0.5, %v1167_v28  ;;  %v1168_v14 = vmul.f32 0.5, %v1620_v36  ;;  %1643 = vtanh.f32 %v1046_v29  ;;  %v1047_v41 = vmul.f32 %v2073_v35, %v971_v32  ;;  %v587_v42 = vpop.f32.mrf.mxu0 }
  0xfe   : > { %v683_v43 = vpop.f32.mrf.mxu1  ;;  %v1624_v44 = vpop.eup %1623  ;;  %1263 = vst [vmem:[%s2107_s5 + $0x18] sm:$0xff] %v1199_v37  ;;  %v1200_v46 = vadd.f32 0.5, %v1136_v38  ;;  %v1137_v47 = vmul.f32 0.5, %v1622_v40  ;;  %1645 = vtanh.f32 %v1015_v39  ;;  %v940_v48 = vmul.f32 %v2047_v16, %v581_v8 }
  0xff   : > { %v881_v45 = vpop.permute.xlu0 %880  ;;  %v1626_v49 = vpop.eup %1625  ;;  %1295 = vst [vmem:[%s2107_s5 + $0x118] sm:$0xff] %v1231_v15  ;;  %v1232_v50 = vadd.f32 0.5, %v1168_v14  ;;  %v1169_v51 = vmul.f32 0.5, %v1624_v44  ;;  %1647 = vtanh.f32 %v1047_v41  ;;  %v941_v59 = vmul.f32 %v2047_v16, %v583_v33 }
 0x100   : > { %v972_v52 = vmul.f32 %v881_v45, %v677_v9  ;;  %v589_v53 = vpop.f32.mrf.mxu0  ;;  %v685_v54 = vpop.f32.mrf.mxu1  ;;  %1264 = vst [vmem:[%s2107_s5 + $0x20] sm:$0xff] %v1200_v46  ;;  %v1201_v56 = vadd.f32 0.5, %v1137_v47  ;;  %v1138_v57 = vmul.f32 0.5, %v1626_v49  ;;  %v1016_v58 = vmul.f32 %v2069_v30, %v940_v48 }
 0x101   : > { %v1628_v55 = vpop.eup %1627  ;;  %1296 = vst [vmem:[%s2107_s5 + $0x120] sm:$0xff] %v1232_v50  ;;  %v1233_v60 = vadd.f32 0.5, %v1169_v51  ;;  %v973_v63 = vmul.f32 %v881_v45, %v679_v34  ;;  %v1017_v6 = vmul.f32 %v2073_v35, %v941_v59  ;;  %v886_v21 = vpop.permute.xlu1 %885  ;;  %v942_v27 = vmul.f32 %v2049_v17, %v587_v42 }
 0x102   : > { %v1630_v0 = vpop.eup %1629  ;;  %v1170_v61 = vmul.f32 0.5, %v1628_v55  ;;  %v1048_v62 = vmul.f32 %v2069_v30, %v972_v52  ;;  %v593_v1 = vpop.f32.mrf.mxu0  ;;  %1265 = vst [vmem:[%s2107_s5 + $0x28] sm:$0xff] %v1201_v56  ;;  %v1202_v4 = vadd.f32 0.5, %v1138_v57  ;;  %1649 = vtanh.f32 %v1016_v58 }
 0x103   : > { %v689_v2 = vpop.f32.mrf.mxu1  ;;  %v1632_v3 = vpop.eup %1631  ;;  %v1139_v5 = vmul.f32 0.5, %v1630_v0  ;;  %1297 = vst [vmem:[%s2107_s5 + $0x128] sm:$0xff] %v1233_v60  ;;  %v1049_v9 = vmul.f32 %v2073_v35, %v973_v63  ;;  %v974_v33 = vmul.f32 %v886_v21, %v683_v43  ;;  %v1018_v40 = vmul.f32 %v2069_v30, %v942_v27 }
 0x104   : > { %v1634_v7 = vpop.eup %1633  ;;  %v1234_v16 = vadd.f32 0.5, %v1170_v61  ;;  %v1171_v8 = vmul.f32 0.5, %v1632_v3  ;;  %1651 = vtanh.f32 %v1048_v62  ;;  %v595_v10 = vpop.f32.mrf.mxu0  ;;  %1266 = vst [vmem:[%s2107_s5 + $0x30] sm:$0xff] %v1202_v4  ;;  %v943_v15 = vmul.f32 %v2049_v17, %v589_v53 }
 0x105   : > { %v691_v11 = vpop.f32.mrf.mxu1  ;;  %v1636_v13 = vpop.eup %1635  ;;  %v1203_v24 = vadd.f32 0.5, %v1139_v5  ;;  %v1140_v12 = vmul.f32 0.5, %v1634_v7  ;;  %1653 = vtanh.f32 %v1017_v6  ;;  %v1050_v42 = vmul.f32 %v2069_v30, %v974_v33 }
 0x106   : > { %v1638_v28 = vpop.eup %1637  ;;  %1298 = vst [vmem:[%s2107_s5 + $0x130] sm:$0xff] %v1234_v16  ;;  %v1235_v29 = vadd.f32 0.5, %v1171_v8  ;;  %v1172_v32 = vmul.f32 0.5, %v1636_v13  ;;  %1655 = vtanh.f32 %v1049_v9  ;;  %v599_v34 = vpop.f32.mrf.mxu0  ;;  %v975_v44 = vmul.f32 %v886_v21, %v685_v54 }
 0x107   : > { %v695_v36 = vpop.f32.mrf.mxu1  ;;  %v1640_v37 = vpop.eup %1639  ;;  %1267 = vst [vmem:[%s2107_s5 + $0x38] sm:$0xff] %v1203_v24  ;;  %v1204_v38 = vadd.f32 0.5, %v1140_v12  ;;  %v1141_v39 = vmul.f32 0.5, %v1638_v28  ;;  %1657 = vtanh.f32 %v1018_v40  ;;  %v1019_v48 = vmul.f32 %v2073_v35, %v943_v15 }
 0x108   : > { %1299 = vst [vmem:[%s2107_s5 + $0x138] sm:$0xff] %v1235_v29  ;;  %v1236_v14 = vadd.f32 0.5, %v1172_v32  ;;  %v1173_v41 = vmul.f32 0.5, %v1640_v37  ;;  %v601_v45 = vpop.f32.mrf.mxu0  ;;  %v891_v46 = vpop.permute.xlu0 %890  ;;  %v944_v49 = vmul.f32 %v2051_v18, %v593_v1  ;;  %1659 = vtanh.f32 %v1050_v42 }
 0x109   : > { %v697_v43 = vpop.f32.mrf.mxu1  ;;  %1268 = vst [vmem:[%s2107_s5 + $0x40] sm:$0xff] %v1204_v38  ;;  %v1205_v47 = vadd.f32 0.5, %v1141_v39  ;;  %v1642_v50 = vpop.eup %1641  ;;  %v1051_v51 = vmul.f32 %v2073_v35, %v975_v44  ;;  %v976_v52 = vmul.f32 %v891_v46, %v689_v2  ;;  %1661 = vtanh.f32 %v1019_v48 }
 0x10a   : > { %1300 = vst [vmem:[%s2107_s5 + $0x140] sm:$0xff] %v1236_v14  ;;  %v1237_v17 = vadd.f32 0.5, %v1173_v41  ;;  %v605_v53 = vpop.f32.mrf.mxu0  ;;  %v1644_v55 = vpop.eup %1643  ;;  %v1142_v56 = vmul.f32 0.5, %v1642_v50  ;;  %v1020_v57 = vmul.f32 %v2069_v30, %v944_v49  ;;  %v945_v58 = vmul.f32 %v2051_v18, %v595_v10 }
 0x10b   : > { %v701_v54 = vpop.f32.mrf.mxu1  ;;  %1269 = vst [vmem:[%s2107_s5 + $0x48] sm:$0xff] %v1205_v47  ;;  %v1646_v59 = vpop.eup %1645  ;;  %v1174_v0 = vmul.f32 0.5, %v1644_v55  ;;  %1663 = vtanh.f32 %v1051_v51  ;;  %v1052_v60 = vmul.f32 %v2069_v30, %v976_v52  ;;  %v977_v61 = vmul.f32 %v891_v46, %v691_v11 }
 0x10c   : > { %1301 = vst [vmem:[%s2107_s5 + $0x148] sm:$0xff] %v1237_v17  ;;  %v607_v62 = vpop.f32.mrf.mxu0  ;;  %v1648_v1 = vpop.eup %1647  ;;  %v1206_v3 = vadd.f32 0.5, %v1142_v56  ;;  %v1143_v4 = vmul.f32 0.5, %v1646_v59  ;;  %1665 = vtanh.f32 %v1020_v57  ;;  %v1021_v5 = vmul.f32 %v2073_v35, %v945_v58 }
 0x10d   : > { %v703_v63 = vpop.f32.mrf.mxu1  ;;  %v896_v2 = vpop.permute.xlu1 %895  ;;  %v1238_v6 = vadd.f32 0.5, %v1174_v0  ;;  %v1175_v18 = vmul.f32 0.5, %v1648_v1  ;;  %1667 = vtanh.f32 %v1052_v60  ;;  %v1053_v7 = vmul.f32 %v2073_v35, %v977_v61 }
 0x10e   : > { %v611_v16 = vpop.f32.mrf.mxu0  ;;  %1270 = vst [vmem:[%s2107_s5 + $0x50] sm:$0xff] %v1206_v3  ;;  %v1207_v9 = vadd.f32 0.5, %v1143_v4  ;;  %1669 = vtanh.f32 %v1021_v5  ;;  %v946_v10 = vmul.f32 %v2053_v19, %v599_v34  ;;  %v978_v11 = vmul.f32 %v896_v2, %v695_v36  ;;  %v901_v32 = vpop.permute.xlu0 %900 }
 0x10f   : > { %v707_v8 = vpop.f32.mrf.mxu1  ;;  %v1650_v13 = vpop.eup %1649  ;;  %1302 = vst [vmem:[%s2107_s5 + $0x150] sm:$0xff] %v1238_v6  ;;  %v1239_v21 = vadd.f32 0.5, %v1175_v18  ;;  %1671 = vtanh.f32 %v1053_v7  ;;  %v947_v24 = vmul.f32 %v2053_v19, %v601_v45  ;;  %v979_v12 = vmul.f32 %v896_v2, %v697_v43 }
 0x110   : > { %v613_v27 = vpop.f32.mrf.mxu0  ;;  %1271 = vst [vmem:[%s2107_s5 + $0x58] sm:$0xff] %v1207_v9  ;;  %v1144_v33 = vmul.f32 0.5, %v1650_v13  ;;  %v1022_v37 = vmul.f32 %v2069_v30, %v946_v10  ;;  %v1054_v38 = vmul.f32 %v2069_v30, %v978_v11  ;;  %v948_v34 = vmul.f32 %v2055_v20, %v605_v53 }
 0x111   : > { %v709_v28 = vpop.f32.mrf.mxu1  ;;  %v1652_v29 = vpop.eup %1651  ;;  %1303 = vst [vmem:[%s2107_s5 + $0x158] sm:$0xff] %v1239_v21  ;;  %v1023_v40 = vmul.f32 %v2073_v35, %v947_v24  ;;  %v1055_v19 = vmul.f32 %v2073_v35, %v979_v12  ;;  %v980_v15 = vmul.f32 %v901_v32, %v701_v54  ;;  %v949_v52 = vmul.f32 %v2055_v20, %v607_v62 }
 0x112   : > { %v1654_v36 = vpop.eup %1653  ;;  %v1176_v39 = vmul.f32 0.5, %v1652_v29  ;;  %v2164_v14 = vpop.f32.mrf.mxu0  ;;  %v1208_v44 = vadd.f32 0.5, %v1144_v33  ;;  %1673 = vtanh.f32 %v1022_v37  ;;  %v1024_v43 = vmul.f32 %v2069_v30, %v948_v34 }
 0x113   : > { %v2166_v41 = vpop.f32.mrf.mxu1  ;;  %v1656_v42 = vpop.eup %1655  ;;  %v1145_v45 = vmul.f32 0.5, %v1654_v36  ;;  %1675 = vtanh.f32 %v1054_v38  ;;  %v1056_v48 = vmul.f32 %v2069_v30, %v980_v15  ;;  %v981_v53 = vmul.f32 %v901_v32, %v703_v63 }
 0x114   : > { %v1240_v46 = vadd.f32 0.5, %v1176_v39  ;;  %v1177_v47 = vmul.f32 0.5, %v1656_v42  ;;  %v2170_v49 = vpop.f32.mrf.mxu0  ;;  %v906_v17 = vpop.permute.xlu1 %905  ;;  %1272 = vst [vmem:[%s2107_s5 + $0x60] sm:$0xff] %v1208_v44  ;;  %1677 = vtanh.f32 %v1023_v40  ;;  %v950_v56 = vmul.f32 %v2057_v22, %v611_v16 }
 0x115   : > { %v2172_v50 = vpop.f32.mrf.mxu1  ;;  %v1209_v51 = vadd.f32 0.5, %v1145_v45  ;;  %v1658_v54 = vpop.eup %1657  ;;  %1679 = vtanh.f32 %v1055_v19  ;;  %v982_v57 = vmul.f32 %v906_v17, %v707_v8  ;;  %v1025_v0 = vmul.f32 %v2073_v35, %v949_v52 }
 0x116   : > { %1304 = vst [vmem:[%s2107_s5 + $0x160] sm:$0xff] %v1240_v46  ;;  %v1241_v55 = vadd.f32 0.5, %v1177_v47  ;;  %v1660_v58 = vpop.eup %1659  ;;  %v1146_v59 = vmul.f32 0.5, %v1658_v54  ;;  %1681 = vtanh.f32 %v1024_v43  ;;  %v1057_v60 = vmul.f32 %v2073_v35, %v981_v53  ;;  %v623_v61 = vpop.f32.mrf.mxu0 }
 0x117   : > { %1273 = vst [vmem:[%s2107_s5 + $0x68] sm:$0xff] %v1209_v51  ;;  %v719_v1 = vpop.f32.mrf.mxu1  ;;  %v1662_v20 = vpop.eup %1661  ;;  %v1178_v62 = vmul.f32 0.5, %v1660_v58  ;;  %1683 = vtanh.f32 %v1056_v48  ;;  %v1026_v63 = vmul.f32 %v2069_v30, %v950_v56  ;;  %v1058_v2 = vmul.f32 %v2069_v30, %v982_v57 }
 0x118   : > { %1305 = vst [vmem:[%s2107_s5 + $0x168] sm:$0xff] %v1241_v55  ;;  %v1664_v3 = vpop.eup %1663  ;;  %v1210_v4 = vadd.f32 0.5, %v1146_v59  ;;  %v1147_v5 = vmul.f32 0.5, %v1662_v20  ;;  %1685 = vtanh.f32 %v1025_v0  ;;  %v951_v6 = vmul.f32 %v2057_v22, %v613_v27  ;;  %v625_v21 = vpop.f32.mrf.mxu0 }
 0x119   : > { %v1666_v18 = vpop.eup %1665  ;;  %v1242_v7 = vadd.f32 0.5, %v1178_v62  ;;  %v1179_v16 = vmul.f32 0.5, %v1664_v3  ;;  %1687 = vtanh.f32 %v1057_v60  ;;  %v983_v8 = vmul.f32 %v906_v17, %v709_v28  ;;  %v721_v24 = vpop.f32.mrf.mxu1 }
 0x11a   : > { %v1668_v9 = vpop.eup %1667  ;;  %1274 = vst [vmem:[%s2107_s5 + $0x70] sm:$0xff] %v1210_v4  ;;  %v1211_v10 = vadd.f32 0.5, %v1147_v5  ;;  %v1148_v11 = vmul.f32 0.5, %v1666_v18  ;;  %1689 = vtanh.f32 %v1026_v63  ;;  %v1027_v13 = vmul.f32 %v2073_v35, %v951_v6  ;;  %v911_v32 = vpop.permute.xlu0 %910 }
 0x11b   : > { %v1670_v12 = vpop.eup %1669  ;;  %1306 = vst [vmem:[%s2107_s5 + $0x170] sm:$0xff] %v1242_v7  ;;  %v1243_v29 = vadd.f32 0.5, %v1179_v16  ;;  %v1180_v22 = vmul.f32 0.5, %v1668_v9  ;;  %1691 = vtanh.f32 %v1058_v2  ;;  %v1059_v27 = vmul.f32 %v2073_v35, %v983_v8  ;;  %v916_v34 = vpop.permute.xlu1 %915 }
 0x11c   : > { %v1672_v28 = vpop.eup %1671  ;;  %1275 = vst [vmem:[%s2107_s5 + $0x78] sm:$0xff] %v1211_v10  ;;  %v1212_v33 = vadd.f32 0.5, %v1148_v11  ;;  %v1149_v37 = vmul.f32 0.5, %v1670_v12  ;;  %1693 = vtanh.f32 %v1027_v13  ;;  %v952_v38 = vmul.f32 %v2059_v23, %v2164_v14  ;;  %v629_v45 = vpop.f32.mrf.mxu0 }
 0x11d   : > { %1307 = vst [vmem:[%s2107_s5 + $0x178] sm:$0xff] %v1243_v29  ;;  %v1244_v36 = vadd.f32 0.5, %v1180_v22  ;;  %v1181_v39 = vmul.f32 0.5, %v1672_v28  ;;  %1695 = vtanh.f32 %v1059_v27  ;;  %v984_v40 = vmul.f32 %v911_v32, %v2166_v41  ;;  %v725_v14 = vpop.f32.mrf.mxu1 }
 0x11e   : > { %1276 = vst [vmem:[%s2107_s5 + $0x80] sm:$0xff] %v1212_v33  ;;  %v1213_v19 = vadd.f32 0.5, %v1149_v37  ;;  %v1028_v15 = vmul.f32 %v2069_v30, %v952_v38  ;;  %v953_v42 = vmul.f32 %v2059_v23, %v2170_v49  ;;  %v985_v44 = vmul.f32 %v911_v32, %v2172_v50  ;;  %v631_v59 = vpop.f32.mrf.mxu0  ;;  %v921_v5 = vpop.permute.xlu0 %920 }
 0x11f   : > { %v1674_v43 = vpop.eup %1673  ;;  %1308 = vst [vmem:[%s2107_s5 + $0x180] sm:$0xff] %v1244_v36  ;;  %v1245_v46 = vadd.f32 0.5, %v1181_v39  ;;  %v1060_v47 = vmul.f32 %v2069_v30, %v984_v40  ;;  %v954_v48 = vmul.f32 %v2065_v25, %v623_v61  ;;  %v986_v41 = vmul.f32 %v916_v34, %v719_v1  ;;  %v727_v0 = vpop.f32.mrf.mxu1 }
 0x120   : > { %v1676_v17 = vpop.eup %1675  ;;  %1277 = vst [vmem:[%s2107_s5 + $0x88] sm:$0xff] %v1213_v19  ;;  %v1150_v51 = vmul.f32 0.5, %v1674_v43  ;;  %1697 = vtanh.f32 %v1028_v15  ;;  %v1029_v52 = vmul.f32 %v2073_v35, %v953_v42  ;;  %v1061_v23 = vmul.f32 %v2073_v35, %v985_v44  ;;  %v635_v10 = vpop.f32.mrf.mxu0 }
 0x121   : > { %v1678_v49 = vpop.eup %1677  ;;  %1309 = vst [vmem:[%s2107_s5 + $0x188] sm:$0xff] %v1245_v46  ;;  %v1182_v50 = vmul.f32 0.5, %v1676_v17  ;;  %1699 = vtanh.f32 %v1060_v47  ;;  %v1030_v53 = vmul.f32 %v2069_v30, %v954_v48  ;;  %v1062_v54 = vmul.f32 %v2069_v30, %v986_v41  ;;  %v731_v11 = vpop.f32.mrf.mxu1 }
 0x122   : > { %v1680_v55 = vpop.eup %1679  ;;  %v1214_v56 = vadd.f32 0.5, %v1150_v51  ;;  %v1151_v57 = vmul.f32 0.5, %v1678_v49  ;;  %1701 = vtanh.f32 %v1029_v52  ;;  %v955_v58 = vmul.f32 %v2065_v25, %v625_v21  ;;  %v637_v42 = vpop.f32.mrf.mxu0 }
 0x123   : > { %v1682_v60 = vpop.eup %1681  ;;  %v1246_v61 = vadd.f32 0.5, %v1182_v50  ;;  %v1183_v1 = vmul.f32 0.5, %v1680_v55  ;;  %1703 = vtanh.f32 %v1061_v23  ;;  %v987_v20 = vmul.f32 %v916_v34, %v721_v24  ;;  %v733_v44 = vpop.f32.mrf.mxu1 }
 0x124   : > { %v1684_v62 = vpop.eup %1683  ;;  %1278 = vst [vmem:[%s2107_s5 + $0x90] sm:$0xff] %v1214_v56  ;;  %v1215_v63 = vadd.f32 0.5, %v1151_v57  ;;  %v1152_v2 = vmul.f32 0.5, %v1682_v60  ;;  %1705 = vtanh.f32 %v1030_v53  ;;  %v1031_v3 = vmul.f32 %v2073_v35, %v955_v58 }
 0x125   : > { %v1686_v4 = vpop.eup %1685  ;;  %1310 = vst [vmem:[%s2107_s5 + $0x190] sm:$0xff] %v1246_v61  ;;  %v1247_v25 = vadd.f32 0.5, %v1183_v1  ;;  %v1184_v6 = vmul.f32 0.5, %v1684_v62  ;;  %1707 = vtanh.f32 %v1062_v54  ;;  %v1063_v18 = vmul.f32 %v2073_v35, %v987_v20 }
 0x126   : > { %v1688_v7 = vpop.eup %1687  ;;  %1279 = vst [vmem:[%s2107_s5 + $0x98] sm:$0xff] %v1215_v63  ;;  %v1216_v16 = vadd.f32 0.5, %v1152_v2  ;;  %v1153_v8 = vmul.f32 0.5, %v1686_v4  ;;  %1709 = vtanh.f32 %v1031_v3  ;;  %v956_v9 = vmul.f32 %v2067_v26, %v629_v45 }
 0x127   : > { %v1690_v13 = vpop.eup %1689  ;;  %1311 = vst [vmem:[%s2107_s5 + $0x198] sm:$0xff] %v1247_v25  ;;  %v1248_v21 = vadd.f32 0.5, %v1184_v6  ;;  %v1185_v24 = vmul.f32 0.5, %v1688_v7  ;;  %1711 = vtanh.f32 %v1063_v18  ;;  %v988_v12 = vmul.f32 %v921_v5, %v725_v14 }
 0x128   : > { %v1692_v29 = vpop.eup %1691  ;;  %1280 = vst [vmem:[%s2107_s5 + $0xa0] sm:$0xff] %v1216_v16  ;;  %v1217_v22 = vadd.f32 0.5, %v1153_v8  ;;  %v1154_v27 = vmul.f32 0.5, %v1690_v13  ;;  %v1032_v28 = vmul.f32 %v2069_v30, %v956_v9  ;;  %v957_v32 = vmul.f32 %v2067_v26, %v631_v59  ;;  %v926_v26 = vpop.permute.xlu1 %925 }
 0x129   : > { %v1694_v33 = vpop.eup %1693  ;;  %1312 = vst [vmem:[%s2107_s5 + $0x1a0] sm:$0xff] %v1248_v21  ;;  %v1249_v37 = vadd.f32 0.5, %v1185_v24  ;;  %v1186_v38 = vmul.f32 0.5, %v1692_v29  ;;  %v1064_v34 = vmul.f32 %v2069_v30, %v988_v12  ;;  %v989_v36 = vmul.f32 %v921_v5, %v727_v0 }
 0x12a   : > { %v1696_v39 = vpop.eup %1695  ;;  %1281 = vst [vmem:[%s2107_s5 + $0xa8] sm:$0xff] %v1217_v22  ;;  %v1218_v40 = vadd.f32 0.5, %v1154_v27  ;;  %v1155_v19 = vmul.f32 0.5, %v1694_v33  ;;  %1713 = vtanh.f32 %v1032_v28  ;;  %v1033_v15 = vmul.f32 %v2073_v35, %v957_v32 }
 0x12b   : > { %1313 = vst [vmem:[%s2107_s5 + $0x1a8] sm:$0xff] %v1249_v37  ;;  %v1250_v45 = vadd.f32 0.5, %v1186_v38  ;;  %v1187_v14 = vmul.f32 0.5, %v1696_v39  ;;  %1715 = vtanh.f32 %v1064_v34  ;;  %v1065_v43 = vmul.f32 %v2073_v35, %v989_v36 }
 0x12c   : > { %1282 = vst [vmem:[%s2107_s5 + $0xb0] sm:$0xff] %v1218_v40  ;;  %v1219_v46 = vadd.f32 0.5, %v1155_v19  ;;  %1717 = vtanh.f32 %v1033_v15  ;;  %v958_v47 = vmul.f32 %v2071_v31, %v635_v10  ;;  %v990_v48 = vmul.f32 %v926_v26, %v731_v11 }
 0x12d   : > { %v1698_v41 = vpop.eup %1697  ;;  %1314 = vst [vmem:[%s2107_s5 + $0x1b0] sm:$0xff] %v1250_v45  ;;  %v1251_v17 = vadd.f32 0.5, %v1187_v14  ;;  %1719 = vtanh.f32 %v1065_v43  ;;  %v959_v51 = vmul.f32 %v2071_v31, %v637_v42  ;;  %v991_v52 = vmul.f32 %v926_v26, %v733_v44 }
 0x12e   : > { %v1700_v23 = vpop.eup %1699  ;;  %1283 = vst [vmem:[%s2107_s5 + $0xb8] sm:$0xff] %v1219_v46  ;;  %v1156_v49 = vmul.f32 0.5, %v1698_v41  ;;  %v1034_v50 = vmul.f32 %v2069_v30, %v958_v47  ;;  %v1066_v53 = vmul.f32 %v2069_v30, %v990_v48 }
 0x12f   : > { %v1702_v54 = vpop.eup %1701  ;;  %1315 = vst [vmem:[%s2107_s5 + $0x1b8] sm:$0xff] %v1251_v17  ;;  %v1188_v55 = vmul.f32 0.5, %v1700_v23  ;;  %v1035_v56 = vmul.f32 %v2073_v35, %v959_v51  ;;  %v1067_v57 = vmul.f32 %v2073_v35, %v991_v52 }
 0x130   : > { %v1704_v58 = vpop.eup %1703  ;;  %v1220_v59 = vadd.f32 0.5, %v1156_v49  ;;  %v1157_v31 = vmul.f32 0.5, %v1702_v54  ;;  %1721 = vtanh.f32 %v1034_v50 }
 0x131   : > { %v1706_v0 = vpop.eup %1705  ;;  %v1252_v60 = vadd.f32 0.5, %v1188_v55  ;;  %v1189_v61 = vmul.f32 0.5, %v1704_v58  ;;  %1723 = vtanh.f32 %v1066_v53 }
 0x132   : > { %v1708_v1 = vpop.eup %1707  ;;  %1284 = vst [vmem:[%s2107_s5 + $0xc0] sm:$0xff] %v1220_v59  ;;  %v1221_v30 = vadd.f32 0.5, %v1157_v31  ;;  %v1158_v20 = vmul.f32 0.5, %v1706_v0  ;;  %1725 = vtanh.f32 %v1035_v56 }
 0x133   : > { %v1710_v62 = vpop.eup %1709  ;;  %1316 = vst [vmem:[%s2107_s5 + $0x1c0] sm:$0xff] %v1252_v60  ;;  %v1253_v35 = vadd.f32 0.5, %v1189_v61  ;;  %v1190_v63 = vmul.f32 0.5, %v1708_v1  ;;  %1727 = vtanh.f32 %v1067_v57 }
 0x134   : > { %v1712_v2 = vpop.eup %1711  ;;  %1285 = vst [vmem:[%s2107_s5 + $0xc8] sm:$0xff] %v1221_v30  ;;  %v1222_v3 = vadd.f32 0.5, %v1158_v20  ;;  %v1159_v4 = vmul.f32 0.5, %v1710_v62 }
 0x135   : > { %1317 = vst [vmem:[%s2107_s5 + $0x1c8] sm:$0xff] %v1253_v35  ;;  %v1254_v5 = vadd.f32 0.5, %v1190_v63  ;;  %v1191_v25 = vmul.f32 0.5, %v1712_v2 }
 0x136   : > { %1286 = vst [vmem:[%s2107_s5 + $0xd0] sm:$0xff] %v1222_v3  ;;  %v1223_v6 = vadd.f32 0.5, %v1159_v4 }
 0x137   : > { %v1714_v18 = vpop.eup %1713  ;;  %1318 = vst [vmem:[%s2107_s5 + $0x1d0] sm:$0xff] %v1254_v5  ;;  %v1255_v7 = vadd.f32 0.5, %v1191_v25 }
 0x138   : > { %v1716_v16 = vpop.eup %1715  ;;  %1287 = vst [vmem:[%s2107_s5 + $0xd8] sm:$0xff] %v1223_v6  ;;  %v1160_v8 = vmul.f32 0.5, %v1714_v18 }
 0x139   : > { %v1718_v9 = vpop.eup %1717  ;;  %1319 = vst [vmem:[%s2107_s5 + $0x1d8] sm:$0xff] %v1255_v7  ;;  %v1192_v10 = vmul.f32 0.5, %v1716_v16 }
 0x13a   : > { %v1720_v11 = vpop.eup %1719  ;;  %v1224_v13 = vadd.f32 0.5, %v1160_v8  ;;  %v1161_v21 = vmul.f32 0.5, %v1718_v9 }
 0x13b   : > { %v1256_v24 = vadd.f32 0.5, %v1192_v10  ;;  %v1193_v12 = vmul.f32 0.5, %v1720_v11 }
 0x13c   : > { %1288 = vst [vmem:[%s2107_s5 + $0xe0] sm:$0xff] %v1224_v13  ;;  %v1225_v29 = vadd.f32 0.5, %v1161_v21 }
 0x13d   : > { %v1722_v22 = vpop.eup %1721  ;;  %1320 = vst [vmem:[%s2107_s5 + $0x1e0] sm:$0xff] %v1256_v24  ;;  %v1257_v27 = vadd.f32 0.5, %v1193_v12 }
 0x13e   : > { %v1724_v28 = vpop.eup %1723  ;;  %1289 = vst [vmem:[%s2107_s5 + $0xe8] sm:$0xff] %v1225_v29  ;;  %v1162_v32 = vmul.f32 0.5, %v1722_v22 }
 0x13f   : > { %v1726_v33 = vpop.eup %1725  ;;  %1321 = vst [vmem:[%s2107_s5 + $0x1e8] sm:$0xff] %v1257_v27  ;;  %v1194_v37 = vmul.f32 0.5, %v1724_v28 }
 0x140   : > { %v1728_v38 = vpop.eup %1727  ;;  %v1226_v34 = vadd.f32 0.5, %v1162_v32  ;;  %v1163_v36 = vmul.f32 0.5, %v1726_v33 }
 0x141   : > { %v1258_v39 = vadd.f32 0.5, %v1194_v37  ;;  %v1195_v40 = vmul.f32 0.5, %v1728_v38 }
 0x142   : > { %1290 = vst [vmem:[%s2107_s5 + $0xf0] sm:$0xff] %v1226_v34  ;;  %v1227_v19 = vadd.f32 0.5, %v1163_v36 }
 0x143   : > { %1322 = vst [vmem:[%s2107_s5 + $0x1f0] sm:$0xff] %v1258_v39  ;;  %v1259_v15 = vadd.f32 0.5, %v1195_v40 }
 0x144   : > { %1291 = vst [vmem:[%s2107_s5 + $0xf8] sm:$0xff] %v1227_v19 }
 0x145   : > { %1323 = vst [vmem:[%s2107_s5 + $0x1f8] sm:$0xff] %v1259_v15 }
 0x146   : > { %1742 = shalt.err (!%p1739_p5)
}
 0x147   : > { %s1743_s21 = scalar_lea.hbm %s2253_s10, 8192  ;;  %s1747_s26 = scalar_lea.hbm %s2311_s4, 16384 }
 0x148   : > { %p1744_p6 = scmp.ne.s32.totalorder %s2253_s10, %s1743_s21  ;;  %p1748_p10 = scmp.lt.s32.totalorder %s2253_s10, %s2311_s4 }
 0x149   : > { %p1749_p11 = scmp.lt.s32.totalorder %s1747_s26, %s1743_s21 }
 0x14a   : > { %p1745_p7 = pnand %p1744_p6, %p1877_p4 }
 0x14b   : > { %p1750_p12 = por %p1749_p11, %p1748_p10 }
 0x14c   : > { %p1746_p9 = pneg %p1745_p7 }
 0x14e   : > { %p1751_p13 = pnand %p1750_p12, %p1746_p9 }
 0x150   : > { %1754 = shalt.err (!%p1751_p13)
}
 0x151   : > { %s1810_s5 = smov 256   ;;  %s1811_s6 = smov 16  }
 0x152   : > { %1540 = dma.vmem_to_hbm [thread:$0]  (%p1877_p4), %s2255_s7, 8192, %s2253_s10, %s2262_s18, %s1810_s5, %s1810_s5, %s1811_s6  }
 0x153 PF: > { %p1546_p0 = scmp.ge.s32.totalorder %s1805_s20, 2  ;;  %s1358_s8 = sand.u32 1, %s1785_s15  }
 0x154   : > { %s1359_s9 = scalar_lea.sflag [#allocation3], %s1358_s8 }
 0x155   : > { %p1543_p1 = pnand %p1546_p0, %p1884_p8 }
 0x157   : > { %p1544_p2 = pneg %p1543_p1 }
 0x159   : > { %1780 = dma.done.wait (%p1544_p2), %s1359_s9, 8192  }
 0x15a   : > { %1782 = vsyncadd (%p1544_p2), %s1359_s9, 4294959104  ;;  %s17_s20 = sadd.s32 1, %s1805_s20   ;;  %s2314_s15 = smov %s1789_s16 }
 0x15b   : > { %p14_p3 = scmp.ge.s32.totalorder %s17_s20, 4   ;;  %s2315_s16 = smov %s1793_s17 }
 0x15c   : > { %s2316_s17 = smov %s1890_s28  ;;  %s2317_s18 = smov %s1801_s19 }
 0x15d   : > { %s2318_s19 = smov %s2320_s23  ;;  %16 = sbr.rel (!%p14_p3) target bundleno = 4 (0x4), region = 80 }
 0x162   :  { %1364 = vsyncpa [#allocation3], 1 }
 0x163   :  { %1366 = vsyncpa [#allocation3 + $0x1], 1 }

</bundles_post_ra>
